<compile_context>
chip_gen: v7x
topology: tpu7x:2x2x1
jax: 0.10.0
libtpu: 0.0.40
codegen_flags: <defaults>
</compile_context>

<pallas_src>
import functools

import jax
import jax.numpy as jnp
from jax import lax
from jax.experimental import pallas as pl
from jax.experimental.pallas import tpu as pltpu

NEG_SLOPE = 0.01      # torch.nn.LeakyReLU default
BN_EPS = 1e-5         # torch.nn.BatchNorm2d default


def _leaky(x):
    return jnp.where(x >= 0, x, NEG_SLOPE * x)


def residual_kernel(x_ref, mask_ref, w1_ref, b1_ref, w3_ref, b3_ref, o_ref,
                    *, W):
    # x_ref block: (1, Cin, S) with S = H*W on the lane axis.
    x = x_ref[0]                                            # (Cin, S) f32

    # ---- cbl1: 1x1 conv (BN scale pre-folded into w1) + bias + LeakyReLU ----
    mid = jnp.dot(w1_ref[...], x, preferred_element_type=jnp.float32)
    mid = _leaky(mid + b1_ref[...])                         # (Cmid, S)

    # ---- cbl3: 3x3 conv, padding=1, as 9 masked lane-rolls + one matmul ----
    masks = mask_ref[...]                                   # (9, S) f32, resident
    taps = []
    for k in range(9):
        dy, dx = k // 3 - 1, k % 3 - 1
        off = dy * W + dx                                   # flat-index shift
        # rolled[:, s] == mid[:, (s + off) % S]  (static shift -> lane shifts)
        rolled = mid if off == 0 else jnp.roll(mid, -off, axis=1)
        # Zero-padding at the image border via a precomputed mask (centre tap
        # is always valid -> skip the multiply).
        taps.append(rolled if k == 4 else rolled * masks[k:k + 1, :])
    stacked = jnp.concatenate(taps, axis=0)                 # (9*Cmid, S)

    out = jnp.dot(w3_ref[...], stacked, preferred_element_type=jnp.float32)
    out = _leaky(out + b3_ref[...])                         # (Cin, S)

    # ---- residual add ----
    o_ref[0] = (out + x).astype(o_ref.dtype)


def fold_bn(gamma, beta, mean, var):
    scale = gamma / jnp.sqrt(var + BN_EPS)
    shift = beta - mean * scale
    return scale, shift


def _border_masks(H, W):
    """(9, H*W) f32: mask[k, s] == 1 iff tap k at flat position s stays in-image."""
    S = H * W
    pos = jnp.arange(S, dtype=jnp.int32)
    xi = pos % W
    yi = pos // W
    rows = []
    for k in range(9):
        dy, dx = k // 3 - 1, k % 3 - 1
        valid = ((xi + dx >= 0) & (xi + dx < W) &
                 (yi + dy >= 0) & (yi + dy < H))
        rows.append(valid)
    return jnp.stack(rows).astype(jnp.float32)


@jax.jit
def residual_forward(x_nchw, params):
    """x_nchw: (N, Cin, H, W) float32. Returns (N, Cin, H, W)."""
    (w1_oihw, g1, be1, m1, v1, w3_oihw, g3, be3, m3, v3) = params
    N, Cin, H, W = x_nchw.shape
    Cmid = w1_oihw.shape[0]
    S = H * W

    # Fold the BN scale into the conv weights (per output channel = per row);
    # only the bias add is done in-kernel.
    s1, b1 = fold_bn(g1, be1, m1, v1)                       # (Cmid,)
    s3, b3 = fold_bn(g3, be3, m3, v3)                       # (Cin,)
    w1t = w1_oihw[:, :, 0, 0] * s1[:, None]                 # (Cmid, Cin)
    # (Cin, Cmid, 3, 3) -> (Cin, 3, 3, Cmid) -> (Cin, 9*Cmid); column order
    # matches the kernel's tap concatenation (k = ky*3 + kx, then Cmid).
    w3p = jnp.transpose(w3_oihw, (0, 2, 3, 1)).reshape(Cin, 9 * Cmid)
    w3p = w3p * s3[:, None]
    b1 = b1.reshape(Cmid, 1)
    b3 = b3.reshape(Cin, 1)

    mask = _border_masks(H, W)                              # (9, S), const-folded
    x_flat = x_nchw.reshape(N, Cin, S)                      # free reshape

    out_flat = pl.pallas_call(
        functools.partial(residual_kernel, W=W),
        out_shape=jax.ShapeDtypeStruct((N, Cin, S), x_flat.dtype),
        grid_spec=pltpu.PrefetchScalarGridSpec(
            num_scalar_prefetch=0,
            grid=(N,),
            in_specs=[
                pl.BlockSpec((1, Cin, S), lambda b: (b, 0, 0)),
                pl.BlockSpec((9, S), lambda b: (0, 0)),
                pl.BlockSpec((Cmid, Cin), lambda b: (0, 0)),
                pl.BlockSpec((Cmid, 1), lambda b: (0, 0)),
                pl.BlockSpec((Cin, 9 * Cmid), lambda b: (0, 0)),
                pl.BlockSpec((Cin, 1), lambda b: (0, 0)),
            ],
            out_specs=pl.BlockSpec((1, Cin, S), lambda b: (b, 0, 0)),
        ),
        compiler_params=pltpu.CompilerParams(
            dimension_semantics=("parallel",)),
    )(x_flat, mask, w1t, b1, w3p, b3)

    return out_flat.reshape(N, Cin, H, W)                   # free reshape


def reference_forward(x_nchw, params):
    """Pure-JAX reference mirroring the PyTorch module (inference BN)."""
    (w1, g1, be1, m1, v1, w3, g3, be3, m3, v3) = params
    dn = ("NCHW", "OIHW", "NCHW")
    y = lax.conv_general_dilated(x_nchw, w1, (1, 1), "VALID",
                                 dimension_numbers=dn)
    s1, b1 = fold_bn(g1, be1, m1, v1)
    y = _leaky(y * s1[None, :, None, None] + b1[None, :, None, None])
    z = lax.conv_general_dilated(y, w3, (1, 1), ((1, 1), (1, 1)),
                                 dimension_numbers=dn)
    s3, b3 = fold_bn(g3, be3, m3, v3)
    z = _leaky(z * s3[None, :, None, None] + b3[None, :, None, None])
    return z + x_nchw


def init_params(key, channel_in, cbl1_out):
    ks = jax.random.split(key, 6)
    w1 = jax.random.normal(ks[0], (cbl1_out, channel_in, 1, 1),
                           jnp.float32) * 0.1
    w3 = jax.random.normal(ks[1], (channel_in, cbl1_out, 3, 3),
                           jnp.float32) * 0.1
    g1 = 1.0 + 0.1 * jax.random.normal(ks[2], (cbl1_out,), jnp.float32)
    be1 = 0.1 * jax.random.normal(ks[3], (cbl1_out,), jnp.float32)
    m1 = jnp.zeros((cbl1_out,), jnp.float32)
    v1 = jnp.ones((cbl1_out,), jnp.float32)
    g3 = 1.0 + 0.1 * jax.random.normal(ks[4], (channel_in,), jnp.float32)
    be3 = 0.1 * jax.random.normal(ks[5], (channel_in,), jnp.float32)
    m3 = jnp.zeros((channel_in,), jnp.float32)
    v3 = jnp.ones((channel_in,), jnp.float32)
    return (w1, g1, be1, m1, v1, w3, g3, be3, m3, v3)


if __name__ == "__main__":
    N, Cin, Cmid, H, W = 2, 4, 8, 16, 16
    key = jax.random.PRNGKey(0)
    kx, kp = jax.random.split(key)
    x = jax.random.normal(kx, (N, Cin, H, W), jnp.float32)
    params = init_params(kp, Cin, Cmid)

    out = residual_forward(x, params)
    out = jax.block_until_ready(out)

    ref = reference_forward(x, params)
    assert out.shape == (N, Cin, H, W)
    assert jnp.allclose(out, ref, atol=1e-4, rtol=1e-4), (
        float(jnp.max(jnp.abs(out - ref))))
    print("KERNEL_OK")
</pallas_src>

<mosaic_0001>
module attributes {stable_mosaic.version = 11 : i64} {
  func.func @residual_kernel(%arg0: i32, %arg1: memref<1x4x256xf32, #tpu.memory_space<vmem>>, %arg2: memref<9x256xf32, #tpu.memory_space<vmem>>, %arg3: memref<8x4xf32, #tpu.memory_space<vmem>>, %arg4: memref<8x1xf32, #tpu.memory_space<vmem>>, %arg5: memref<4x72xf32, #tpu.memory_space<vmem>>, %arg6: memref<4x1xf32, #tpu.memory_space<vmem>>, %arg7: memref<1x4x256xf32, #tpu.memory_space<vmem>>) attributes {dimension_semantics = [#tpu.dimension_semantics<parallel>], iteration_bounds = array<i64: 2>, scalar_prefetch = 0 : i64, scratch_operands = 0 : i64, tpu.core_type = #tpu.core_type<tc>, window_params = [{transform_indices = @transform_0, window_bounds = array<i64: 1, 4, 256>}, {pipeline_mode = #tpu.pipeline_mode<synchronous>, transform_indices = @transform_1, window_bounds = array<i64: 9, 256>}, {pipeline_mode = #tpu.pipeline_mode<synchronous>, transform_indices = @transform_2, window_bounds = array<i64: 8, 4>}, {pipeline_mode = #tpu.pipeline_mode<synchronous>, transform_indices = @transform_3, window_bounds = array<i64: 8, 1>}, {pipeline_mode = #tpu.pipeline_mode<synchronous>, transform_indices = @transform_4, window_bounds = array<i64: 4, 72>}, {pipeline_mode = #tpu.pipeline_mode<synchronous>, transform_indices = @transform_5, window_bounds = array<i64: 4, 1>}, {transform_indices = @transform_6, window_bounds = array<i64: 1, 4, 256>}]} {
    %c0 = arith.constant 0 : index
    %c0_0 = arith.constant 0 : index
    %c0_1 = arith.constant 0 : index
    %0 = vector.load %arg1[%c0, %c0_0, %c0_1] : memref<1x4x256xf32, #tpu.memory_space<vmem>>, vector<1x4x256xf32>
    %1 = vector.shape_cast %0 : vector<1x4x256xf32> to vector<4x256xf32>
    %c0_2 = arith.constant 0 : index
    %c0_3 = arith.constant 0 : index
    %2 = vector.load %arg3[%c0_2, %c0_3] : memref<8x4xf32, #tpu.memory_space<vmem>>, vector<8x4xf32>
    %cst = arith.constant dense<0.000000e+00> : vector<8x256xf32>
    %3 = tpu.matmul %2, %1, %cst {dimension_numbers = #tpu.dot_dimension_numbers<[1], [0], [0], [1], [0, 0, 1, 1], [], []>} : vector<8x4xf32>, vector<4x256xf32>, vector<8x256xf32> -> vector<8x256xf32>
    %c0_4 = arith.constant 0 : index
    %c0_5 = arith.constant 0 : index
    %4 = vector.load %arg4[%c0_4, %c0_5] : memref<8x1xf32, #tpu.memory_space<vmem>>, vector<8x1xf32>
    %5 = vector.broadcast %4 : vector<8x1xf32> to vector<8x256xf32>
    %6 = arith.addf %3, %5 : vector<8x256xf32>
    %cst_6 = arith.constant 0.000000e+00 : f32
    %7 = vector.broadcast %cst_6 : f32 to vector<8x256xf32>
    %8 = arith.cmpf oge, %6, %7 : vector<8x256xf32>
    %cst_7 = arith.constant 0.00999999977 : f32
    %9 = vector.broadcast %cst_7 : f32 to vector<8x256xf32>
    %10 = arith.mulf %9, %6 : vector<8x256xf32>
    %11 = arith.select %8, %6, %10 : vector<8x256xi1>, vector<8x256xf32>
    %c0_8 = arith.constant 0 : index
    %c0_9 = arith.constant 0 : index
    %12 = vector.load %arg2[%c0_8, %c0_9] : memref<9x256xf32, #tpu.memory_space<vmem>>, vector<9x256xf32>
    %13 = vector.extract_strided_slice %11 {offsets = [0, 239], sizes = [8, 17], strides = [1, 1]} : vector<8x256xf32> to vector<8x17xf32>
    %14 = vector.extract_strided_slice %11 {offsets = [0, 0], sizes = [8, 239], strides = [1, 1]} : vector<8x256xf32> to vector<8x239xf32>
    %15 = tpu.concatenate %13, %14 in 1 : vector<8x17xf32>, vector<8x239xf32> -> vector<8x256xf32>
    %16 = vector.extract_strided_slice %12 {offsets = [0, 0], sizes = [1, 256], strides = [1, 1]} : vector<9x256xf32> to vector<1x256xf32>
    %17 = vector.broadcast %16 : vector<1x256xf32> to vector<8x256xf32>
    %18 = arith.mulf %15, %17 : vector<8x256xf32>
    %19 = vector.extract_strided_slice %11 {offsets = [0, 240], sizes = [8, 16], strides = [1, 1]} : vector<8x256xf32> to vector<8x16xf32>
    %20 = vector.extract_strided_slice %11 {offsets = [0, 0], sizes = [8, 240], strides = [1, 1]} : vector<8x256xf32> to vector<8x240xf32>
    %21 = tpu.concatenate %19, %20 in 1 : vector<8x16xf32>, vector<8x240xf32> -> vector<8x256xf32>
    %22 = vector.extract_strided_slice %12 {offsets = [1, 0], sizes = [1, 256], strides = [1, 1]} : vector<9x256xf32> to vector<1x256xf32>
    %23 = vector.broadcast %22 : vector<1x256xf32> to vector<8x256xf32>
    %24 = arith.mulf %21, %23 : vector<8x256xf32>
    %25 = vector.extract_strided_slice %11 {offsets = [0, 241], sizes = [8, 15], strides = [1, 1]} : vector<8x256xf32> to vector<8x15xf32>
    %26 = vector.extract_strided_slice %11 {offsets = [0, 0], sizes = [8, 241], strides = [1, 1]} : vector<8x256xf32> to vector<8x241xf32>
    %27 = tpu.concatenate %25, %26 in 1 : vector<8x15xf32>, vector<8x241xf32> -> vector<8x256xf32>
    %28 = vector.extract_strided_slice %12 {offsets = [2, 0], sizes = [1, 256], strides = [1, 1]} : vector<9x256xf32> to vector<1x256xf32>
    %29 = vector.broadcast %28 : vector<1x256xf32> to vector<8x256xf32>
    %30 = arith.mulf %27, %29 : vector<8x256xf32>
    %31 = vector.extract_strided_slice %11 {offsets = [0, 255], sizes = [8, 1], strides = [1, 1]} : vector<8x256xf32> to vector<8x1xf32>
    %32 = vector.extract_strided_slice %11 {offsets = [0, 0], sizes = [8, 255], strides = [1, 1]} : vector<8x256xf32> to vector<8x255xf32>
    %33 = tpu.concatenate %31, %32 in 1 : vector<8x1xf32>, vector<8x255xf32> -> vector<8x256xf32>
    %34 = vector.extract_strided_slice %12 {offsets = [3, 0], sizes = [1, 256], strides = [1, 1]} : vector<9x256xf32> to vector<1x256xf32>
    %35 = vector.broadcast %34 : vector<1x256xf32> to vector<8x256xf32>
    %36 = arith.mulf %33, %35 : vector<8x256xf32>
    %37 = vector.extract_strided_slice %11 {offsets = [0, 1], sizes = [8, 255], strides = [1, 1]} : vector<8x256xf32> to vector<8x255xf32>
    %38 = vector.extract_strided_slice %11 {offsets = [0, 0], sizes = [8, 1], strides = [1, 1]} : vector<8x256xf32> to vector<8x1xf32>
    %39 = tpu.concatenate %37, %38 in 1 : vector<8x255xf32>, vector<8x1xf32> -> vector<8x256xf32>
    %40 = vector.extract_strided_slice %12 {offsets = [5, 0], sizes = [1, 256], strides = [1, 1]} : vector<9x256xf32> to vector<1x256xf32>
    %41 = vector.broadcast %40 : vector<1x256xf32> to vector<8x256xf32>
    %42 = arith.mulf %39, %41 : vector<8x256xf32>
    %43 = vector.extract_strided_slice %11 {offsets = [0, 15], sizes = [8, 241], strides = [1, 1]} : vector<8x256xf32> to vector<8x241xf32>
    %44 = vector.extract_strided_slice %11 {offsets = [0, 0], sizes = [8, 15], strides = [1, 1]} : vector<8x256xf32> to vector<8x15xf32>
    %45 = tpu.concatenate %43, %44 in 1 : vector<8x241xf32>, vector<8x15xf32> -> vector<8x256xf32>
    %46 = vector.extract_strided_slice %12 {offsets = [6, 0], sizes = [1, 256], strides = [1, 1]} : vector<9x256xf32> to vector<1x256xf32>
    %47 = vector.broadcast %46 : vector<1x256xf32> to vector<8x256xf32>
    %48 = arith.mulf %45, %47 : vector<8x256xf32>
    %49 = vector.extract_strided_slice %11 {offsets = [0, 16], sizes = [8, 240], strides = [1, 1]} : vector<8x256xf32> to vector<8x240xf32>
    %50 = vector.extract_strided_slice %11 {offsets = [0, 0], sizes = [8, 16], strides = [1, 1]} : vector<8x256xf32> to vector<8x16xf32>
    %51 = tpu.concatenate %49, %50 in 1 : vector<8x240xf32>, vector<8x16xf32> -> vector<8x256xf32>
    %52 = vector.extract_strided_slice %12 {offsets = [7, 0], sizes = [1, 256], strides = [1, 1]} : vector<9x256xf32> to vector<1x256xf32>
    %53 = vector.broadcast %52 : vector<1x256xf32> to vector<8x256xf32>
    %54 = arith.mulf %51, %53 : vector<8x256xf32>
    %55 = vector.extract_strided_slice %11 {offsets = [0, 17], sizes = [8, 239], strides = [1, 1]} : vector<8x256xf32> to vector<8x239xf32>
    %56 = vector.extract_strided_slice %11 {offsets = [0, 0], sizes = [8, 17], strides = [1, 1]} : vector<8x256xf32> to vector<8x17xf32>
    %57 = tpu.concatenate %55, %56 in 1 : vector<8x239xf32>, vector<8x17xf32> -> vector<8x256xf32>
    %58 = vector.extract_strided_slice %12 {offsets = [8, 0], sizes = [1, 256], strides = [1, 1]} : vector<9x256xf32> to vector<1x256xf32>
    %59 = vector.broadcast %58 : vector<1x256xf32> to vector<8x256xf32>
    %60 = arith.mulf %57, %59 : vector<8x256xf32>
    %61 = tpu.concatenate %18, %24, %30, %36, %11, %42, %48, %54, %60 in 0 : vector<8x256xf32>, vector<8x256xf32>, vector<8x256xf32>, vector<8x256xf32>, vector<8x256xf32>, vector<8x256xf32>, vector<8x256xf32>, vector<8x256xf32>, vector<8x256xf32> -> vector<72x256xf32>
    %c0_10 = arith.constant 0 : index
    %c0_11 = arith.constant 0 : index
    %62 = vector.load %arg5[%c0_10, %c0_11] : memref<4x72xf32, #tpu.memory_space<vmem>>, vector<4x72xf32>
    %cst_12 = arith.constant dense<0.000000e+00> : vector<4x256xf32>
    %63 = tpu.matmul %62, %61, %cst_12 {dimension_numbers = #tpu.dot_dimension_numbers<[1], [0], [0], [1], [0, 0, 1, 1], [], []>} : vector<4x72xf32>, vector<72x256xf32>, vector<4x256xf32> -> vector<4x256xf32>
    %c0_13 = arith.constant 0 : index
    %c0_14 = arith.constant 0 : index
    %64 = vector.load %arg6[%c0_13, %c0_14] : memref<4x1xf32, #tpu.memory_space<vmem>>, vector<4x1xf32>
    %65 = vector.broadcast %64 : vector<4x1xf32> to vector<4x256xf32>
    %66 = arith.addf %63, %65 : vector<4x256xf32>
    %cst_15 = arith.constant 0.000000e+00 : f32
    %67 = vector.broadcast %cst_15 : f32 to vector<4x256xf32>
    %68 = arith.cmpf oge, %66, %67 : vector<4x256xf32>
    %cst_16 = arith.constant 0.00999999977 : f32
    %69 = vector.broadcast %cst_16 : f32 to vector<4x256xf32>
    %70 = arith.mulf %69, %66 : vector<4x256xf32>
    %71 = arith.select %68, %66, %70 : vector<4x256xi1>, vector<4x256xf32>
    %72 = arith.addf %71, %1 : vector<4x256xf32>
    %c0_17 = arith.constant 0 : index
    %c0_18 = arith.constant 0 : index
    %c0_19 = arith.constant 0 : index
    %73 = vector.load %arg7[%c0_17, %c0_18, %c0_19] : memref<1x4x256xf32, #tpu.memory_space<vmem>>, vector<1x4x256xf32>
    %74 = vector.shape_cast %73 : vector<1x4x256xf32> to vector<4x256xf32>
    %75 = vector.shape_cast %72 : vector<4x256xf32> to vector<1x4x256xf32>
    tpu.vector_store %arg7[%c0_17, %c0_18, %c0_19], %75 {strides = array<i32>} : memref<1x4x256xf32, #tpu.memory_space<vmem>>, vector<1x4x256xf32>,
    return
  }
  func.func @transform_0(%arg0: i32) -> (i32, i32, i32) {
    %c0_i32 = arith.constant 0 : i32
    %c0_i32_0 = arith.constant 0 : i32
    %c0_i32_1 = arith.constant 0 : i32
    return %arg0, %c0_i32, %c0_i32_0 : i32, i32, i32
  }
  func.func @transform_1(%arg0: i32) -> (i32, i32) {
    %c0_i32 = arith.constant 0 : i32
    %c0_i32_0 = arith.constant 0 : i32
    %c0_i32_1 = arith.constant 0 : i32
    return %c0_i32, %c0_i32_0 : i32, i32
  }
  func.func @transform_2(%arg0: i32) -> (i32, i32) {
    %c0_i32 = arith.constant 0 : i32
    %c0_i32_0 = arith.constant 0 : i32
    %c0_i32_1 = arith.constant 0 : i32
    return %c0_i32, %c0_i32_0 : i32, i32
  }
  func.func @transform_3(%arg0: i32) -> (i32, i32) {
    %c0_i32 = arith.constant 0 : i32
    %c0_i32_0 = arith.constant 0 : i32
    %c0_i32_1 = arith.constant 0 : i32
    return %c0_i32, %c0_i32_0 : i32, i32
  }
  func.func @transform_4(%arg0: i32) -> (i32, i32) {
    %c0_i32 = arith.constant 0 : i32
    %c0_i32_0 = arith.constant 0 : i32
    %c0_i32_1 = arith.constant 0 : i32
    return %c0_i32, %c0_i32_0 : i32, i32
  }
  func.func @transform_5(%arg0: i32) -> (i32, i32) {
    %c0_i32 = arith.constant 0 : i32
    %c0_i32_0 = arith.constant 0 : i32
    %c0_i32_1 = arith.constant 0 : i32
    return %c0_i32, %c0_i32_0 : i32, i32
  }
  func.func @transform_6(%arg0: i32) -> (i32, i32, i32) {
    %c0_i32 = arith.constant 0 : i32
    %c0_i32_0 = arith.constant 0 : i32
    %c0_i32_1 = arith.constant 0 : i32
    return %arg0, %c0_i32, %c0_i32_0 : i32, i32, i32
  }
}

</mosaic_0001>

<bundles_post_ra>
// kernel: residual_forward.1
= control target key start
LH: loop header
LB: loop body
LE: loop exit
PB: predicated region body
PF: predicated region fallthrough
CT: control target
= control target key end

     0   :  { %s774_s21 = smov 0   ;;  %s880_s0 = inlined_call_operand.vmem [shape: f32[2,4,256], index: 0, kind: input, shape index: {}]   ;;  %s881_s1 = inlined_call_operand.vmem [shape: f32[9,256], index: 1, kind: input, shape index: {}]   ;;  %s882_s2 = inlined_call_operand.vmem [shape: f32[8,4], index: 2, kind: input, shape index: {}]   ;;  %s883_s3 = inlined_call_operand.vmem [shape: f32[8,1], index: 3, kind: input, shape index: {}]   ;;  %s884_s4 = inlined_call_operand.vmem [shape: f32[4,72], index: 4, kind: input, shape index: {}]   ;;  %s885_s5 = inlined_call_operand.vmem [shape: f32[4,1], index: 5, kind: input, shape index: {}]   ;;  %s886_s6 = inlined_call_operand.vmem [shape: f32[2,4,256], index: 6, kind: output, shape index: {}]  }
   0x1 LB: > { %s665_s22 = sadd.s32 4294967295, %s727_s21   ;;  %p669_p0 = scmp.ge.s32.totalorder %s727_s21, 1  ;;  %s727_s21 = sphi %s774_s21, %s16_s21  }
   0x2   : > { %p212_p1 = scmp.lt.s32.totalorder %s727_s21, 3 }
   0x4   : > { %p213_p2 = pnand %p669_p0, %p212_p1 }
   0x5   : > { %p242_p3 = scmp.lt.s32.totalorder (!%p213_p2), %s665_s22, 1  ;;  %v729_v0 = vmov (!%p213_p2), 0.0   ;;  %v730_v1 = vmov (!%p213_p2), 0   ;;  %v254_v2 = vld [vmem:[%s883_s3] sm:$0xff] (!%p213_p2)  ;;  %vm266_vm0 = vcmask (!%p213_p2), 1043456   ;;  %vm262_vm1 = vcmask (!%p213_p2), 31744  }
   0x6   : > { %216 = sbr.rel (%p213_p2) target bundleno = 611 (0x263), region = 44  ;;  %335 = vmatprep.mubr.f32.mxu0 (!%p213_p2), %v729_v0  ;;  %718 = vset.pattern.permute.xlu0 (!%p213_p2), %v730_v1  ;;  %v253_v5 = vld [vmem:[%s882_s2] sm:$0xff] (!%p213_p2)  ;;  %s731_s7 = smov (!%p213_p2), 16   ;;  %v364_v16 = vlaneseq (!%p213_p2)  ;;  %v349_v25 = vld [vmem:[%s881_s1 + $0x8] sm:$0xff] (!%p213_p2)  ;;  %vm379_vm4 = vcmask (!%p213_p2), 130048   ;;  %vm359_vm5 = vcmask (!%p213_p2), 138240  }
   0x7   : > { %257 = vperm.xlu0 (!%p213_p2), %718, %v254_v2   ;;  %589 = vmatprep.mubr.f32.mxu1 (!%p213_p2), %v729_v0  ;;  %s732_s8 = smov (!%p213_p2), 17   ;;  %s733_s9 = smov (!%p213_p2), 15   ;;  %v515_v15 = vld [vmem:[%s885_s5] sm:$0xf] (!%p213_p2)  ;;  %vm399_vm6 = vcmask (!%p213_p2), 121856   ;;  %vm438_vm7 = vcmask (!%p213_p2), 1039360  }
   0x8   : > { %719 = vset.pattern.permute.xlu1 (!%p213_p2), %v730_v1  ;;  %s734_s10 = smov (!%p213_p2), 127   ;;  %s735_s11 = smov (!%p213_p2), 1   ;;  %v827_v19 = vshrl.u32 (!%p213_p2), %v364_v16, 7  ;;  %v833_v23 = vld [vmem:[%s881_s1] sm:$0xff] (!%p213_p2)  ;;  %vm419_vm8 = vcmask (!%p213_p2), 7168   ;;  %vm458_vm9 = vcmask (!%p213_p2), 924672  }
   0x9   : > { %s736_s12 = smov (!%p213_p2), 113   ;;  %s737_s13 = smov (!%p213_p2), 112   ;;  %vm478_vm10 = vcmask (!%p213_p2), 916480   ;;  %vm498_vm11 = vcmask (!%p213_p2), 908288   ;;  %vm521_vm12 = vcmask (!%p213_p2), 588800  }
   0xa   : > { %s738_s14 = smov (!%p213_p2), 111   ;;  %v386_v22 = vsub.s32 (!%p213_p2), 1, %v827_v19  ;;  %v366_v24 = vsub.s32 (!%p213_p2), 0, %v827_v19  ;;  %v406_v26 = vsub.s32 (!%p213_p2), 2, %v827_v19  ;;  %v446_v29 = vsub.s32 (!%p213_p2), 5, %v827_v19 }
   0xb   : > { %v426_v30 = vsub.s32 (!%p213_p2), 3, %v827_v19  ;;  %v466_v53 = vsub.s32 (!%p213_p2), 6, %v827_v19  ;;  %v486_v59 = vsub.s32 (!%p213_p2), 7, %v827_v19 }
   0xc   : > { %v387_v31 = vrot.slane (!%p213_p2), %v833_v23, %v386_v22  ;;  %v391_v32 = vrot.slane (!%p213_p2), %v349_v25, %v386_v22  ;;  %v367_v34 = vrot.slane (!%p213_p2), %v833_v23, %v366_v24  ;;  %v371_v35 = vrot.slane (!%p213_p2), %v349_v25, %v366_v24 }
   0xd   : > { %s888_s22 = smov (!%p242_p3, %s665_s22), 1  ;;  %v407_v37 = vrot.slane %v833_v23, %v406_v26  ;;  %v411_v38 = vrot.slane %v349_v25, %v406_v26  ;;  %v451_v41 = vrot.slane %v349_v25, %v446_v29  ;;  %v427_v42 = vrot.slane %v833_v23, %v426_v30 }
   0xe   : > { %s682_s25 = sshll.u32 %s888_s22, 3  ;;  %v431_v43 = vrot.slane %v349_v25, %v426_v30  ;;  %v447_v52 = vrot.slane %v833_v23, %v446_v29  ;;  %v487_v16 = vrot.slane %v833_v23, %v486_v59 }
   0xf   : > { %s246_s28 = scalar_lea.vmem %s880_s0, %s682_s25 }
  0x10   : > { %v793_v3 = vld [vmem:[%s246_s28] sm:$0xff] }
  0x11   : > { %v797_v4 = vcombine.high %v793_v3, %v793_v3 }
  0x13   : > { %674 = vmatprep.subr.msk.mxu0 %vm266_vm0, %v797_v4 }
  0x14   : > { %675 = vmatpush1.msk.msra.mxu0 %vm266_vm0, %v793_v3 }
  0x15   : > { %676 = vmatmul.mubr.msk.f32.vlgmr.msra.gmra.mrb[0].mxu0 %vm262_vm1, %v253_v5 }
  0x86   : > { %v258_v6 = vpop.permute.xlu0 %257 }
  0xe8   : > { %v337_v7 = vpop.f32.mrb[0].mxu0 }
  0xe9   : > { %v338_v8 = vadd.f32 %v337_v7, %v258_v6  ;;  %v339_v9 = vpop.f32.mrb[1].mxu0 }
  0xea   : > { %v340_v12 = vadd.f32 %v339_v9, %v258_v6 }
  0xeb   : > { %vm342_vm2 = vcmp.ge.f32.partialorder %v338_v8, 0.0  ;;  %v344_v10 = vmul.f32 0.01, %v338_v8 }
  0xec   : > { %v345_v13 = vmul.f32 0.01, %v340_v12  ;;  %vm343_vm3 = vcmp.ge.f32.partialorder %v340_v12, 0.0 }
  0xed   : > { %v804_v11 = vsel %vm342_vm2, %v338_v8, %v344_v10 }
  0xee   : > { %377 = vrot.lane.b32.xlu0 %v804_v11, %s731_s7  ;;  %357 = vrot.lane.b32.xlu1 %v804_v11, %s732_s8  ;;  %v810_v14 = vsel %vm343_vm3, %v340_v12, %v345_v13  ;;  %v467_v12 = vrot.slane %v833_v23, %v466_v53  ;;  %v471_v13 = vrot.slane %v349_v25, %v466_v53 }
  0xf2   : > { %397 = vrot.lane.b32.xlu0 %v804_v11, %s733_s9  ;;  %434 = vrot.lane.b32.xlu1 %v804_v11, %s734_s10 }
  0xf6   : > { %417 = vrot.lane.b32.xlu0 %v804_v11, %s735_s11  ;;  %374 = vrot.lane.b32.xlu1 %v810_v14, %s731_s7 }
  0xfa   : > { %353 = vrot.lane.b32.xlu0 %v810_v14, %s732_s8  ;;  %394 = vrot.lane.b32.xlu1 %v810_v14, %s733_s9  ;;  %s251_s8 = scalar_lea.vmem %s886_s6, %s682_s25 }
  0xfe   : > { %436 = vrot.lane.b32.xlu0 %v810_v14, %s734_s10  ;;  %414 = vrot.lane.b32.xlu1 %v810_v14, %s735_s11 }
 0x102   : > { %456 = vrot.lane.b32.xlu0 %v810_v14, %s736_s12  ;;  %454 = vrot.lane.b32.xlu1 %v804_v11, %s736_s12 }
 0x106   : > { %476 = vrot.lane.b32.xlu0 %v810_v14, %s737_s13  ;;  %474 = vrot.lane.b32.xlu1 %v804_v11, %s737_s13 }
 0x10a   : > { %496 = vrot.lane.b32.xlu0 %v810_v14, %s738_s14  ;;  %494 = vrot.lane.b32.xlu1 %v804_v11, %s738_s14 }
 0x10e   : > { %518 = vperm.xlu1 %719, %v515_v15  }
 0x160   : > { %v378_v17 = vpop.permute.xlu0 %377  ;;  %v358_v18 = vpop.permute.xlu1 %357 }
 0x164   : > { %v398_v20 = vpop.permute.xlu0 %397  ;;  %v435_v21 = vpop.permute.xlu1 %434 }
 0x168   : > { %v418_v27 = vpop.permute.xlu0 %417  ;;  %v375_v28 = vpop.permute.xlu1 %374 }
 0x169   : > { %v383_v33 = vsel %vm379_vm4, %v375_v28, %v378_v17  ;;  %v380_v36 = vsel %vm379_vm4, %v378_v17, %v375_v28  ;;  %v491_v17 = vrot.slane %v349_v25, %v486_v59 }
 0x16a   : > { %v392_v44 = vmul.f32 %v387_v31, %v383_v33  ;;  %v393_v51 = vmul.f32 %v391_v32, %v380_v36 }
 0x16c   : > { %v354_v39 = vpop.permute.xlu0 %353  ;;  %v395_v40 = vpop.permute.xlu1 %394 }
 0x16d   : > { %v360_v45 = vsel %vm359_vm5, %v358_v18, %v354_v39  ;;  %v363_v46 = vsel %vm359_vm5, %v354_v39, %v358_v18  ;;  %v403_v47 = vsel %vm399_vm6, %v395_v40, %v398_v20  ;;  %v400_v49 = vsel %vm399_vm6, %v398_v20, %v395_v40 }
 0x16e   : > { %v372_v48 = vmul.f32 %v367_v34, %v363_v46  ;;  %v373_v50 = vmul.f32 %v371_v35, %v360_v45  ;;  %v412_v54 = vmul.f32 %v407_v37, %v403_v47  ;;  %v413_v60 = vmul.f32 %v411_v38, %v400_v49  ;;  %v677_v34 = vld [vmem:[%s881_s1 + $0x10] ss:$0 sm:$0xff]  ;;  %v514_v37 = vld [vmem:[%s884_s4] sm:$0xf] }
 0x170   : > { %v437_v55 = vpop.permute.xlu0 %436  ;;  %v415_v56 = vpop.permute.xlu1 %414  ;;  %v684_v57 = vpack.c.bf16 %v393_v51, %v373_v50  ;;  %v686_v58 = vpack.c.bf16 %v392_v44, %v372_v48 }
 0x171   : > { %v443_v61 = vsel %vm438_vm7, %v437_v55, %v435_v21  ;;  %v420_v62 = vsel %vm419_vm8, %v418_v27, %v415_v56  ;;  %v423_v63 = vsel %vm419_vm8, %v415_v56, %v418_v27  ;;  %v439_v0 = vsel %vm438_vm7, %v435_v21, %v437_v55 }
 0x172   : > { %v453_v1 = vmul.f32 %v451_v41, %v443_v61  ;;  %v432_v2 = vmul.f32 %v427_v42, %v423_v63  ;;  %v433_v5 = vmul.f32 %v431_v43, %v420_v62  ;;  %685 = vmatprep.subr.bf16.mxu1 %v684_v57  ;;  %v452_v10 = vmul.f32 %v447_v52, %v439_v0 }
 0x173   : > { %687 = vmatpush1.bf16.msra.mxu1 %v686_v58 }
 0x174   : > { %v457_v6 = vpop.permute.xlu0 %456  ;;  %v455_v7 = vpop.permute.xlu1 %454  ;;  %v688_v8 = vpack.c.bf16 %v433_v5, %v413_v60  ;;  %v690_v9 = vpack.c.bf16 %v432_v2, %v412_v54  ;;  %v692_v15 = vpack.c.bf16 %v453_v1, %v810_v14  ;;  %v694_v26 = vpack.c.bf16 %v452_v10, %v804_v11  ;;  %v678_v14 = vld [vmem:[%s881_s1 + $0x18] ss:$0 sm:$0xff] }
 0x175   : > { %v459_v18 = vsel %vm458_vm9, %v455_v7, %v457_v6  ;;  %v463_v19 = vsel %vm458_vm9, %v457_v6, %v455_v7 }
 0x176   : > { %689 = vmatprep.subr.bf16.mxu1 %v688_v8  ;;  %v472_v27 = vmul.f32 %v467_v12, %v459_v18  ;;  %v473_v28 = vmul.f32 %v471_v13, %v463_v19 }
 0x177   : > { %691 = vmatpush1.bf16.msra.mxu1 %v690_v9 }
 0x178   : > { %v477_v20 = vpop.permute.xlu0 %476  ;;  %693 = vmatprep.subr.bf16.mxu1 %v692_v15  ;;  %v475_v21 = vpop.permute.xlu1 %474 }
 0x179   : > { %v479_v22 = vsel %vm478_vm10, %v475_v21, %v477_v20  ;;  %v483_v24 = vsel %vm478_vm10, %v477_v20, %v475_v21 }
 0x17a   : > { %v492_v29 = vmul.f32 %v487_v16, %v479_v22  ;;  %v493_v30 = vmul.f32 %v491_v17, %v483_v24 }
 0x17b   : > { %695 = vmatpush1.bf16.msra.mxu1 %v694_v26 }
 0x17c   : > { %v497_v23 = vpop.permute.xlu0 %496  ;;  %v495_v25 = vpop.permute.xlu1 %494  ;;  %v696_v31 = vpack.c.bf16 %v493_v30, %v473_v28  ;;  %v698_v32 = vpack.c.bf16 %v492_v29, %v472_v27 }
 0x17d   : > { %v503_v33 = vsel %vm498_vm11, %v497_v23, %v495_v25  ;;  %v499_v11 = vsel %vm498_vm11, %v495_v25, %v497_v23 }
 0x17e   : > { %v513_v35 = vmul.f32 %v678_v14, %v503_v33  ;;  %697 = vmatprep.subr.bf16.mxu1 %v696_v31  ;;  %v512_v36 = vmul.f32 %v677_v34, %v499_v11 }
 0x17f   : > { %699 = vmatpush1.bf16.msra.mxu1 %v698_v32 }
 0x180   : > { %541 = vmatprep.subr.mxu1 %v513_v35 }
 0x183   : > { %542 = vmatpush1.msra.mxu1 %v512_v36 }
 0x184   : > { %679 = vmatmul.mubr.msk.f32.vlgmr.msra.gmra.mrb[0].mxu1 %vm521_vm12, %v514_v37 }
 0x18d   : > { %v519_v38 = vpop.permute.xlu1 %518 }
 0x257   : > { %v591_v39 = vpop.f32.mrb[0].mxu1 }
 0x258   : > { %v592_v40 = vadd.f32 %v591_v39, %v519_v38  ;;  %v593_v41 = vpop.f32.mrb[1].mxu1 }
 0x259   : > { %v594_v42 = vadd.f32 %v593_v41, %v519_v38 }
 0x25a   : > { %vm596_vm13 = vcmp.ge.f32.partialorder %v592_v40, 0.0  ;;  %v598_v43 = vmul.f32 0.01, %v592_v40 }
 0x25b   : > { %vm597_vm14 = vcmp.ge.f32.partialorder %v594_v42, 0.0  ;;  %v599_v44 = vmul.f32 0.01, %v594_v42 }
 0x25c   : > { %v600_v45 = vsel %vm596_vm13, %v592_v40, %v598_v43 }
 0x25d   : > { %v603_v46 = vadd.f32 %v600_v45, %v793_v3  ;;  %v601_v47 = vsel %vm597_vm14, %v594_v42, %v599_v44 }
 0x25e   : > { %v604_v48 = vadd.f32 %v601_v47, %v797_v4 }
 0x260   : > { %v607_v49 = vcombine.low %v603_v46, %v604_v48 }
 0x262   : > { %609 = vst [vmem:[%s251_s8] sm:$0xff] %v607_v49 }
 0x263 PF: > { %s16_s21 = sadd.s32 1, %s727_s21  }
 0x264   : > { %p13_p4 = scmp.ge.s32.totalorder %s16_s21, 4  }
 0x266   :  { %15 = sbr.rel (!%p13_p4) target bundleno = 1 (0x1), region = 74 }

</bundles_post_ra>
